<compile_context>
chip_gen: v6e
topology: v6e:2x2x1
jax: 0.10.0
libtpu: 0.0.40
codegen_flags: <defaults>
</compile_context>

<pallas_src>
import functools

import jax
import jax.numpy as jnp
import numpy as np
from jax.experimental import pallas as pl
from jax.experimental.pallas import tpu as pltpu

BN_EPS = 1e-5
LANE = 128
SUBLANE = 8


def _round_up(v, m):
    return ((v + m - 1) // m) * m


def _pad2d(a, rows, cols, dtype):
    a = a.astype(dtype)
    return jnp.pad(a, ((0, rows - a.shape[0]), (0, cols - a.shape[1])))


# ---------------- fused Pallas kernel ----------------

def _gconv_kernel(inv_n,
                  x_ref, ea_ref, gsrc_ref, gdstT_ref, poolT_ref, mask_ref,
                  we_ref, w1_ref, w2_ref, bias_ref,
                  z_out_ref, g_out_ref,
                  z_scr, agg_scr):
    """Grid = (layer, edge_tile).  Edge tiles accumulate the GINE scatter-add;
    the node MLP + ReLU + BatchNorm1d + global_add_pool run on the last tile."""
    layer = pl.program_id(0)
    et = pl.program_id(1)
    last_et = pl.num_programs(1) - 1

    @pl.when(jnp.logical_and(layer == 0, et == 0))
    def _():
        z_scr[...] = x_ref[...]                     # layer-0 carry = input x

    @pl.when(et == 0)
    def _():
        agg_scr[...] = jnp.zeros_like(agg_scr)      # reset scatter accumulator

    bias = bias_ref[0]                              # (8, F) f32: be,b1,b2,gamma,beta
    z = z_scr[...]                                  # (Np, F) f32 layer carry
    z_bf = z.astype(jnp.bfloat16)

    # edge embedding Linear(edge_dim -> in_dim): bf16 x bf16 MXU, f32 accumulate
    e_emb = jnp.dot(ea_ref[...], we_ref[0],
                    preferred_element_type=jnp.float32) + bias[0:1, :]

    # gather z[src] for this edge tile: (TE, Np) bf16 one-hot @ (Np, F) bf16
    x_src = jnp.dot(gsrc_ref[...], z_bf, preferred_element_type=jnp.float32)

    msg = jnp.maximum(x_src + e_emb, 0.0)           # GINE message

    # scatter-add to destination nodes with the pre-transposed (Np, TE) one-hot
    agg_scr[...] += jnp.dot(gdstT_ref[...], msg.astype(jnp.bfloat16),
                            preferred_element_type=jnp.float32)

    @pl.when(et == last_et)
    def _():
        mask = mask_ref[...]                        # (Np, 1), 1.0 for real nodes
        h = z + agg_scr[...]                        # GINEConv with eps = 0

        # node MLP: Linear -> ReLU -> Linear (bf16 MXU, f32 accumulation)
        h1 = jnp.maximum(
            jnp.dot(h.astype(jnp.bfloat16), w1_ref[0],
                    preferred_element_type=jnp.float32) + bias[1:2, :], 0.0)
        h2 = jnp.dot(h1.astype(jnp.bfloat16), w2_ref[0],
                     preferred_element_type=jnp.float32) + bias[2:3, :]

        # F.relu after the conv; zero padded node rows before batch statistics
        zp = jnp.maximum(h2, 0.0) * mask

        # single-pass BatchNorm1d (training mode, biased stats over true N)
        mean = jnp.sum(zp, axis=0, keepdims=True) * inv_n
        ex2 = jnp.sum(zp * zp, axis=0, keepdims=True) * inv_n
        var = jnp.maximum(ex2 - mean * mean, 0.0)
        z_new = (bias[3:4, :] * (zp - mean) * jax.lax.rsqrt(var + BN_EPS)
                 + bias[4:5, :]) * mask

        z_scr[...] = z_new                          # carry to next layer
        z_out_ref[...] = z_new                      # lane-dense 128-wide slab

        # global_add_pool: (Gp, Np) bf16 one-hot @ (Np, F) bf16
        g_out_ref[...] = jnp.dot(poolT_ref[...], z_new.astype(jnp.bfloat16),
                                 preferred_element_type=jnp.float32)


# ---------------- wrapper ----------------

@functools.partial(jax.jit, static_argnames=("num_graphs",))
def gconv_forward(params, x, edge_index, edge_attr, batch, *, num_graphs):
    layers = params["layers"]
    num_layers = len(layers)
    n, node_dim = x.shape
    e, edge_dim = edge_attr.shape
    hidden = layers[0]["w2"].shape[1]

    feat = _round_up(max(node_dim, hidden), LANE)       # common feature width
    ed_pad = _round_up(edge_dim, LANE)
    n_pad = _round_up(n, SUBLANE)
    g_pad = _round_up(num_graphs, SUBLANE)

    # ---- per-generation VMEM budget and edge-tile selection ----
    try:
        vmem_cap = int(pltpu.get_tpu_info().vmem_capacity_bytes)
    except Exception:
        vmem_cap = 64 * 1024 * 1024                     # conservative (v7x)

    def _resident_bytes(te):
        edge_tiles = 2 * 2 * (te * n_pad + n_pad * te + te * ed_pad)  # bf16, 2-buf
        consts = 2 * (n_pad * feat * 4 + g_pad * n_pad * 2 + n_pad * 4)
        weights = 2 * (2 * (ed_pad * feat + 2 * feat * feat) + 4 * 8 * feat)
        outs = 2 * 4 * feat * (n_pad + g_pad)
        scratch = 2 * 4 * n_pad * feat
        return edge_tiles + consts + weights + outs + scratch

    budget = int(0.70 * vmem_cap)
    te = _round_up(e, LANE)           # whole edge set resident when it fits ...
    while _resident_bytes(te) > budget and te > LANE:
        te = max(_round_up(te // 2, LANE), LANE)        # ... else stream tiles
    e_pad = _round_up(e, te)
    num_edge_tiles = e_pad // te
    vmem_limit = int(min(int(0.75 * vmem_cap),
                         max(_resident_bytes(te) + (8 << 20), 32 << 20)))

    src, dst = edge_index[0], edge_index[1]
    # out-of-range indices for padded edges / nodes -> all-zero one-hot rows/cols
    src_p = jnp.concatenate([src, jnp.full((e_pad - e,), n_pad, src.dtype)])
    dst_p = jnp.concatenate([dst, jnp.full((e_pad - e,), n_pad, dst.dtype)])
    batch_p = jnp.concatenate([batch,
                               jnp.full((n_pad - n,), g_pad, batch.dtype)])

    gsrc = jax.nn.one_hot(src_p, n_pad, dtype=jnp.bfloat16)             # (Ep, Np)
    # scatter / pool one-hots built directly in matmul orientation so the kernel
    # contracts the last LHS dim on the MXU (no in-kernel transpose).
    gdst_t = jax.nn.one_hot(dst_p, n_pad, dtype=jnp.bfloat16, axis=0)   # (Np, Ep)
    pool_t = jax.nn.one_hot(batch_p, g_pad, dtype=jnp.bfloat16, axis=0)  # (Gp, Np)

    x_p = _pad2d(x, n_pad, feat, jnp.float32)
    ea_p = _pad2d(edge_attr, e_pad, ed_pad, jnp.bfloat16)
    mask = (jnp.arange(n_pad) < n).astype(jnp.float32)[:, None]          # (Np, 1)

    # per-layer weights: bf16 matmul operands; f32 bias/affine rows packed into
    # one sublane-aligned (8, F) block per layer (single DMA instead of five).
    we = jnp.stack([_pad2d(lp["we"], ed_pad, feat, jnp.bfloat16) for lp in layers])
    w1 = jnp.stack([_pad2d(lp["w1"], feat, feat, jnp.bfloat16) for lp in layers])
    w2 = jnp.stack([_pad2d(lp["w2"], feat, feat, jnp.bfloat16) for lp in layers])
    bias_pack = jnp.stack([
        jnp.concatenate([_pad2d(lp["be"], 1, feat, jnp.float32),
                         _pad2d(lp["b1"], 1, feat, jnp.float32),
                         _pad2d(lp["b2"], 1, feat, jnp.float32),
                         _pad2d(lp["gamma"], 1, feat, jnp.float32),
                         _pad2d(lp["beta"], 1, feat, jnp.float32),
                         jnp.zeros((3, feat), jnp.float32)], axis=0)
        for lp in layers])                                               # (L, 8, F)

    inputs = (x_p, ea_p, gsrc, gdst_t, pool_t, mask, we, w1, w2, bias_pack)

    const2 = lambda l, t: (0, 0)
    wmap = lambda l, t: (l, 0, 0)

    # advisory cost estimate for the XLA scheduler
    flops = 2 * num_layers * (e_pad * ed_pad * feat
                              + 2 * e_pad * n_pad * feat
                              + 2 * n_pad * feat * feat
                              + g_pad * n_pad * feat)
    edge_bytes = 2 * (gsrc.size + gdst_t.size + ea_p.size)
    other_bytes = sum(int(np.prod(a.shape)) * a.dtype.itemsize
                      for a in (x_p, pool_t, mask, we, w1, w2, bias_pack))
    out_bytes = 4 * (n_pad + g_pad) * num_layers * feat
    cost = pl.CostEstimate(
        flops=int(flops),
        transcendentals=int(num_layers * feat),
        bytes_accessed=int(edge_bytes * (num_layers if num_edge_tiles > 1 else 1)
                           + other_bytes + out_bytes))

    grid_spec = pltpu.PrefetchScalarGridSpec(
        num_scalar_prefetch=0,
        grid=(num_layers, num_edge_tiles),
        in_specs=[
            pl.BlockSpec((n_pad, feat), const2),            # x (layer-0 init)
            pl.BlockSpec((te, ed_pad), lambda l, t: (t, 0)),   # edge_attr tile
            pl.BlockSpec((te, n_pad), lambda l, t: (t, 0)),    # one_hot(src) tile
            pl.BlockSpec((n_pad, te), lambda l, t: (0, t)),    # one_hot(dst).T tile
            pl.BlockSpec((g_pad, n_pad), const2),           # one_hot(batch).T
            pl.BlockSpec((n_pad, 1), const2),               # node validity mask
            pl.BlockSpec((1, ed_pad, feat), wmap),          # we  (per-layer stream)
            pl.BlockSpec((1, feat, feat), wmap),            # w1
            pl.BlockSpec((1, feat, feat), wmap),            # w2
            pl.BlockSpec((1, 8, feat), wmap),               # be/b1/b2/gamma/beta
        ],
        out_specs=[
            pl.BlockSpec((n_pad, feat), lambda l, t: (0, l)),  # z slab (Np, L*F)
            pl.BlockSpec((g_pad, feat), lambda l, t: (0, l)),  # g slab (Gp, L*F)
        ],
        scratch_shapes=[pltpu.VMEM((n_pad, feat), jnp.float32),   # z carry
                        pltpu.VMEM((n_pad, feat), jnp.float32)],  # scatter acc
    )

    z_slab, g_slab = pl.pallas_call(
        functools.partial(_gconv_kernel, 1.0 / n),
        grid_spec=grid_spec,
        out_shape=(
            jax.ShapeDtypeStruct((n_pad, num_layers * feat), jnp.float32),
            jax.ShapeDtypeStruct((g_pad, num_layers * feat), jnp.float32),
        ),
        compiler_params=pltpu.CompilerParams(
            dimension_semantics=("arbitrary", "arbitrary"),
            vmem_limit_bytes=vmem_limit),
        cost_estimate=cost,
    )(*inputs)

    # strip feature / row padding (cheap XLA slices)
    z_cat = z_slab.reshape(n_pad, num_layers, feat)[:n, :, :hidden]
    z_cat = z_cat.reshape(n, num_layers * hidden)
    g_cat = g_slab.reshape(g_pad, num_layers, feat)[:num_graphs, :, :hidden]
    g_cat = g_cat.reshape(num_graphs, num_layers * hidden)
    return z_cat, g_cat


# ---------------- deterministic parameter init ----------------

def init_params(key, node_dim, edge_dim, hidden_dim, num_layers):
    layers = []
    for i in range(num_layers):
        in_dim = node_dim if i == 0 else hidden_dim
        key, *ks = jax.random.split(key, 7)
        layers.append(dict(
            we=jax.random.normal(ks[0], (edge_dim, in_dim), jnp.float32) * 0.1,
            be=jax.random.normal(ks[1], (1, in_dim), jnp.float32) * 0.1,
            w1=jax.random.normal(ks[2], (in_dim, hidden_dim), jnp.float32) * 0.1,
            b1=jax.random.normal(ks[3], (1, hidden_dim), jnp.float32) * 0.1,
            w2=jax.random.normal(ks[4], (hidden_dim, hidden_dim), jnp.float32) * 0.1,
            b2=jax.random.normal(ks[5], (1, hidden_dim), jnp.float32) * 0.1,
            gamma=jnp.ones((1, hidden_dim), jnp.float32),   # BatchNorm1d default
            beta=jnp.zeros((1, hidden_dim), jnp.float32),
        ))
    return {"layers": layers}


# ---------------- pure-JAX reference for verification ----------------

def _bf(a):
    return a.astype(jnp.bfloat16).astype(jnp.float32)


def reference_forward(params, x, edge_index, edge_attr, batch, num_graphs):
    """Module forward in pure JAX.  The `_bf` casts mirror the kernel's bf16
    MXU-operand rounding (remove them for exact f32 PyTorch numerics; the
    structure -- GINEConv(eps=0) + MLP + ReLU + BN + pool -- is identical)."""
    src, dst = edge_index[0], edge_index[1]
    n = x.shape[0]
    z = x.astype(jnp.float32)
    zs = []
    for lp in params["layers"]:
        e_emb = _bf(edge_attr) @ _bf(lp["we"]) + lp["be"]
        msg = jax.nn.relu(_bf(z)[src] + e_emb)
        agg = jax.ops.segment_sum(_bf(msg), dst, num_segments=n)
        h = z + agg                                          # GINEConv, eps = 0
        h1 = jax.nn.relu(_bf(h) @ _bf(lp["w1"]) + lp["b1"])
        h2 = _bf(h1) @ _bf(lp["w2"]) + lp["b2"]
        zp = jax.nn.relu(h2)                                 # F.relu
        mean = zp.mean(0, keepdims=True)                     # BN (training mode)
        var = jnp.maximum((zp * zp).mean(0, keepdims=True) - mean * mean, 0.0)
        z = lp["gamma"] * (zp - mean) * jax.lax.rsqrt(var + BN_EPS) + lp["beta"]
        zs.append(z)
    z_cat = jnp.concatenate(zs, axis=1)
    g_cat = jnp.concatenate(
        [jax.ops.segment_sum(_bf(zz), batch, num_segments=num_graphs)
         for zz in zs], axis=1)
    return z_cat, g_cat


if __name__ == "__main__":
    node_dim, edge_dim, hidden_dim, num_layers = 8, 8, 32, 3
    num_nodes, num_edges, num_graphs = 16, 32, 2

    key = jax.random.PRNGKey(0)
    k_par, k_x, k_ea, k_src, k_dst = jax.random.split(key, 5)

    params = init_params(k_par, node_dim, edge_dim, hidden_dim, num_layers)

    x = jax.random.normal(k_x, (num_nodes, node_dim), jnp.float32)
    edge_attr = jax.random.normal(k_ea, (num_edges, edge_dim), jnp.float32)
    src = jax.random.randint(k_src, (num_edges,), 0, num_nodes)
    dst = jax.random.randint(k_dst, (num_edges,), 0, num_nodes)
    edge_index = jnp.stack([src, dst], axis=0)                  # (2, E)
    batch = jnp.concatenate([jnp.zeros(num_nodes // 2, jnp.int32),
                             jnp.ones(num_nodes - num_nodes // 2, jnp.int32)])

    z_out, g_out = gconv_forward(params, x, edge_index, edge_attr, batch,
                                 num_graphs=num_graphs)
    jax.block_until_ready((z_out, g_out))

    z_ref, g_ref = reference_forward(params, x, edge_index, edge_attr, batch,
                                     num_graphs)
    # Both sides use bf16 MXU operands with f32 accumulation; the tolerance
    # covers reduction-order / one-pass-variance differences.
    np.testing.assert_allclose(np.asarray(z_out), np.asarray(z_ref),
                               rtol=2e-2, atol=2e-2)
    np.testing.assert_allclose(np.asarray(g_out), np.asarray(g_ref),
                               rtol=2e-2, atol=2e-2)

    assert z_out.shape == (num_nodes, hidden_dim * num_layers)
    assert g_out.shape == (num_graphs, hidden_dim * num_layers)
    print("KERNEL_OK")
</pallas_src>

<mosaic_0001>
module attributes {stable_mosaic.version = 11 : i64} {
  func.func @_gconv_kernel(%arg0: i32, %arg1: i32, %arg2: memref<16x128xf32, #tpu.memory_space<vmem>>, %arg3: memref<128x128xbf16, #tpu.memory_space<vmem>>, %arg4: memref<128x16xbf16, #tpu.memory_space<vmem>>, %arg5: memref<16x128xbf16, #tpu.memory_space<vmem>>, %arg6: memref<8x16xbf16, #tpu.memory_space<vmem>>, %arg7: memref<16x1xf32, #tpu.memory_space<vmem>>, %arg8: memref<1x128x128xbf16, #tpu.memory_space<vmem>>, %arg9: memref<1x128x128xbf16, #tpu.memory_space<vmem>>, %arg10: memref<1x128x128xbf16, #tpu.memory_space<vmem>>, %arg11: memref<1x8x128xf32, #tpu.memory_space<vmem>>, %arg12: memref<16x128xf32, #tpu.memory_space<vmem>>, %arg13: memref<8x128xf32, #tpu.memory_space<vmem>>, %arg14: memref<16x128xf32, #tpu.memory_space<vmem>>, %arg15: memref<16x128xf32, #tpu.memory_space<vmem>>) attributes {dimension_semantics = [#tpu.dimension_semantics<arbitrary>, #tpu.dimension_semantics<arbitrary>], iteration_bounds = array<i64: 3, 1>, scalar_prefetch = 0 : i64, scratch_operands = 2 : i64, tpu.core_type = #tpu.core_type<tc>, window_params = [{pipeline_mode = #tpu.pipeline_mode<synchronous>, transform_indices = @transform_0, window_bounds = array<i64: 16, 128>}, {transform_indices = @transform_1, window_bounds = array<i64: 128, 128>}, {transform_indices = @transform_2, window_bounds = array<i64: 128, 16>}, {transform_indices = @transform_3, window_bounds = array<i64: 16, 128>}, {pipeline_mode = #tpu.pipeline_mode<synchronous>, transform_indices = @transform_4, window_bounds = array<i64: 8, 16>}, {pipeline_mode = #tpu.pipeline_mode<synchronous>, transform_indices = @transform_5, window_bounds = array<i64: 16, 1>}, {transform_indices = @transform_6, window_bounds = array<i64: 1, 128, 128>}, {transform_indices = @transform_7, window_bounds = array<i64: 1, 128, 128>}, {transform_indices = @transform_8, window_bounds = array<i64: 1, 128, 128>}, {transform_indices = @transform_9, window_bounds = array<i64: 1, 8, 128>}, {transform_indices = @transform_10, window_bounds = array<i64: 16, 128>}, {transform_indices = @transform_11, window_bounds = array<i64: 8, 128>}]} {
    %c0_i32 = arith.constant 0 : i32
    %0 = arith.cmpi eq, %arg0, %c0_i32 : i32
    %c0_i32_0 = arith.constant 0 : i32
    %1 = arith.cmpi eq, %arg1, %c0_i32_0 : i32
    %2 = arith.andi %0, %1 : i1
    %3 = arith.extui %2 : i1 to i32
    %c0_i32_1 = arith.constant 0 : i32
    %4 = arith.cmpi ne, %3, %c0_i32_1 : i32
    scf.if %4 {
      %c0_26 = arith.constant 0 : index
      %c0_27 = arith.constant 0 : index
      %33 = vector.load %arg2[%c0_26, %c0_27] : memref<16x128xf32, #tpu.memory_space<vmem>>, vector<16x128xf32>
      %c0_28 = arith.constant 0 : index
      %c0_29 = arith.constant 0 : index
      %34 = vector.load %arg14[%c0_28, %c0_29] : memref<16x128xf32, #tpu.memory_space<vmem>>, vector<16x128xf32>
      tpu.vector_store %arg14[%c0_28, %c0_29], %33 {strides = array<i32>} : memref<16x128xf32, #tpu.memory_space<vmem>>, vector<16x128xf32>,
    } else {
    }
    %c0_i32_2 = arith.constant 0 : i32
    %5 = arith.cmpi eq, %arg1, %c0_i32_2 : i32
    %6 = arith.extui %5 : i1 to i32
    %c0_i32_3 = arith.constant 0 : i32
    %7 = arith.cmpi ne, %6, %c0_i32_3 : i32
    scf.if %7 {
      %cst_26 = arith.constant 0.000000e+00 : f32
      %33 = vector.broadcast %cst_26 : f32 to vector<16x128xf32>
      %c0_27 = arith.constant 0 : index
      %c0_28 = arith.constant 0 : index
      %34 = vector.load %arg15[%c0_27, %c0_28] : memref<16x128xf32, #tpu.memory_space<vmem>>, vector<16x128xf32>
      tpu.vector_store %arg15[%c0_27, %c0_28], %33 {strides = array<i32>} : memref<16x128xf32, #tpu.memory_space<vmem>>, vector<16x128xf32>,
    } else {
    }
    %c0 = arith.constant 0 : index
    %c0_4 = arith.constant 0 : index
    %c0_5 = arith.constant 0 : index
    %8 = vector.load %arg11[%c0, %c0_4, %c0_5] : memref<1x8x128xf32, #tpu.memory_space<vmem>>, vector<1x8x128xf32>
    %9 = vector.shape_cast %8 : vector<1x8x128xf32> to vector<8x128xf32>
    %c0_6 = arith.constant 0 : index
    %c0_7 = arith.constant 0 : index
    %10 = vector.load %arg14[%c0_6, %c0_7] : memref<16x128xf32, #tpu.memory_space<vmem>>, vector<16x128xf32>
    %11 = arith.truncf %10 : vector<16x128xf32> to vector<16x128xbf16>
    %c0_8 = arith.constant 0 : index
    %c0_9 = arith.constant 0 : index
    %12 = vector.load %arg3[%c0_8, %c0_9] : memref<128x128xbf16, #tpu.memory_space<vmem>>, vector<128x128xbf16>
    %c0_10 = arith.constant 0 : index
    %c0_11 = arith.constant 0 : index
    %c0_12 = arith.constant 0 : index
    %13 = vector.load %arg8[%c0_10, %c0_11, %c0_12] : memref<1x128x128xbf16, #tpu.memory_space<vmem>>, vector<1x128x128xbf16>
    %14 = vector.shape_cast %13 : vector<1x128x128xbf16> to vector<128x128xbf16>
    %cst = arith.constant dense<0.000000e+00> : vector<128x128xf32>
    %15 = tpu.matmul %12, %14, %cst {dimension_numbers = #tpu.dot_dimension_numbers<[1], [0], [0], [1], [0, 0, 1, 1], [], []>} : vector<128x128xbf16>, vector<128x128xbf16>, vector<128x128xf32> -> vector<128x128xf32>
    %16 = vector.extract_strided_slice %9 {offsets = [0, 0], sizes = [1, 128], strides = [1, 1]} : vector<8x128xf32> to vector<1x128xf32>
    %17 = vector.broadcast %16 : vector<1x128xf32> to vector<128x128xf32>
    %18 = arith.addf %15, %17 : vector<128x128xf32>
    %c0_13 = arith.constant 0 : index
    %c0_14 = arith.constant 0 : index
    %19 = vector.load %arg4[%c0_13, %c0_14] : memref<128x16xbf16, #tpu.memory_space<vmem>>, vector<128x16xbf16>
    %cst_15 = arith.constant dense<0.000000e+00> : vector<128x128xf32>
    %20 = tpu.matmul %19, %11, %cst_15 {dimension_numbers = #tpu.dot_dimension_numbers<[1], [0], [0], [1], [0, 0, 1, 1], [], []>} : vector<128x16xbf16>, vector<16x128xbf16>, vector<128x128xf32> -> vector<128x128xf32>
    %21 = arith.addf %20, %18 : vector<128x128xf32>
    %cst_16 = arith.constant 0.000000e+00 : f32
    %22 = vector.broadcast %cst_16 : f32 to vector<128x128xf32>
    %23 = arith.maximumf %21, %22 : vector<128x128xf32>
    %c0_17 = arith.constant 0 : index
    %c0_18 = arith.constant 0 : index
    %24 = vector.load %arg15[%c0_17, %c0_18] : memref<16x128xf32, #tpu.memory_space<vmem>>, vector<16x128xf32>
    %c0_19 = arith.constant 0 : index
    %c0_20 = arith.constant 0 : index
    %25 = vector.load %arg5[%c0_19, %c0_20] : memref<16x128xbf16, #tpu.memory_space<vmem>>, vector<16x128xbf16>
    %26 = arith.truncf %23 : vector<128x128xf32> to vector<128x128xbf16>
    %cst_21 = arith.constant dense<0.000000e+00> : vector<16x128xf32>
    %27 = tpu.matmul %25, %26, %cst_21 {dimension_numbers = #tpu.dot_dimension_numbers<[1], [0], [0], [1], [0, 0, 1, 1], [], []>} : vector<16x128xbf16>, vector<128x128xbf16>, vector<16x128xf32> -> vector<16x128xf32>
    %28 = arith.addf %24, %27 : vector<16x128xf32>
    %c0_22 = arith.constant 0 : index
    %c0_23 = arith.constant 0 : index
    %29 = vector.load %arg15[%c0_22, %c0_23] : memref<16x128xf32, #tpu.memory_space<vmem>>, vector<16x128xf32>
    tpu.vector_store %arg15[%c0_22, %c0_23], %28 {strides = array<i32>} : memref<16x128xf32, #tpu.memory_space<vmem>>, vector<16x128xf32>,
    %c0_i32_24 = arith.constant 0 : i32
    %30 = arith.cmpi eq, %arg1, %c0_i32_24 : i32
    %31 = arith.extui %30 : i1 to i32
    %c0_i32_25 = arith.constant 0 : i32
    %32 = arith.cmpi ne, %31, %c0_i32_25 : i32
    scf.if %32 {
      %c0_26 = arith.constant 0 : index
      %c0_27 = arith.constant 0 : index
      %33 = vector.load %arg7[%c0_26, %c0_27] : memref<16x1xf32, #tpu.memory_space<vmem>>, vector<16x1xf32>
      %c0_28 = arith.constant 0 : index
      %c0_29 = arith.constant 0 : index
      %34 = vector.load %arg15[%c0_28, %c0_29] : memref<16x128xf32, #tpu.memory_space<vmem>>, vector<16x128xf32>
      %35 = arith.addf %10, %34 : vector<16x128xf32>
      %36 = arith.truncf %35 : vector<16x128xf32> to vector<16x128xbf16>
      %c0_30 = arith.constant 0 : index
      %c0_31 = arith.constant 0 : index
      %c0_32 = arith.constant 0 : index
      %37 = vector.load %arg9[%c0_30, %c0_31, %c0_32] : memref<1x128x128xbf16, #tpu.memory_space<vmem>>, vector<1x128x128xbf16>
      %38 = vector.shape_cast %37 : vector<1x128x128xbf16> to vector<128x128xbf16>
      %cst_33 = arith.constant dense<0.000000e+00> : vector<16x128xf32>
      %39 = tpu.matmul %36, %38, %cst_33 {dimension_numbers = #tpu.dot_dimension_numbers<[1], [0], [0], [1], [0, 0, 1, 1], [], []>} : vector<16x128xbf16>, vector<128x128xbf16>, vector<16x128xf32> -> vector<16x128xf32>
      %40 = vector.extract_strided_slice %9 {offsets = [1, 0], sizes = [1, 128], strides = [1, 1]} : vector<8x128xf32> to vector<1x128xf32>
      %41 = vector.broadcast %40 : vector<1x128xf32> to vector<16x128xf32>
      %42 = arith.addf %39, %41 : vector<16x128xf32>
      %cst_34 = arith.constant 0.000000e+00 : f32
      %43 = vector.broadcast %cst_34 : f32 to vector<16x128xf32>
      %44 = arith.maximumf %42, %43 : vector<16x128xf32>
      %45 = arith.truncf %44 : vector<16x128xf32> to vector<16x128xbf16>
      %c0_35 = arith.constant 0 : index
      %c0_36 = arith.constant 0 : index
      %c0_37 = arith.constant 0 : index
      %46 = vector.load %arg10[%c0_35, %c0_36, %c0_37] : memref<1x128x128xbf16, #tpu.memory_space<vmem>>, vector<1x128x128xbf16>
      %47 = vector.shape_cast %46 : vector<1x128x128xbf16> to vector<128x128xbf16>
      %cst_38 = arith.constant dense<0.000000e+00> : vector<16x128xf32>
      %48 = tpu.matmul %45, %47, %cst_38 {dimension_numbers = #tpu.dot_dimension_numbers<[1], [0], [0], [1], [0, 0, 1, 1], [], []>} : vector<16x128xbf16>, vector<128x128xbf16>, vector<16x128xf32> -> vector<16x128xf32>
      %49 = vector.extract_strided_slice %9 {offsets = [2, 0], sizes = [1, 128], strides = [1, 1]} : vector<8x128xf32> to vector<1x128xf32>
      %50 = vector.broadcast %49 : vector<1x128xf32> to vector<16x128xf32>
      %51 = arith.addf %48, %50 : vector<16x128xf32>
      %cst_39 = arith.constant 0.000000e+00 : f32
      %52 = vector.broadcast %cst_39 : f32 to vector<16x128xf32>
      %53 = arith.maximumf %51, %52 : vector<16x128xf32>
      %54 = vector.broadcast %33 : vector<16x1xf32> to vector<16x128xf32>
      %55 = arith.mulf %53, %54 : vector<16x128xf32>
      %cst_40 = arith.constant dense<0.000000e+00> : vector<128xf32>
      %56 = vector.multi_reduction <add>, %55, %cst_40 [0] : vector<16x128xf32> to vector<128xf32>
      %57 = vector.shape_cast %56 : vector<128xf32> to vector<1x128xf32>
      %cst_41 = arith.constant 6.250000e-02 : f32
      %58 = vector.broadcast %cst_41 : f32 to vector<1x128xf32>
      %59 = arith.mulf %57, %58 : vector<1x128xf32>
      %60 = arith.mulf %55, %55 : vector<16x128xf32>
      %cst_42 = arith.constant dense<0.000000e+00> : vector<128xf32>
      %61 = vector.multi_reduction <add>, %60, %cst_42 [0] : vector<16x128xf32> to vector<128xf32>
      %62 = vector.shape_cast %61 : vector<128xf32> to vector<1x128xf32>
      %cst_43 = arith.constant 6.250000e-02 : f32
      %63 = vector.broadcast %cst_43 : f32 to vector<1x128xf32>
      %64 = arith.mulf %62, %63 : vector<1x128xf32>
      %65 = arith.mulf %59, %59 : vector<1x128xf32>
      %66 = arith.subf %64, %65 : vector<1x128xf32>
      %cst_44 = arith.constant 0.000000e+00 : f32
      %67 = vector.broadcast %cst_44 : f32 to vector<1x128xf32>
      %68 = arith.maximumf %66, %67 : vector<1x128xf32>
      %69 = vector.extract_strided_slice %9 {offsets = [3, 0], sizes = [1, 128], strides = [1, 1]} : vector<8x128xf32> to vector<1x128xf32>
      %70 = vector.broadcast %59 : vector<1x128xf32> to vector<16x128xf32>
      %71 = arith.subf %55, %70 : vector<16x128xf32>
      %72 = vector.broadcast %69 : vector<1x128xf32> to vector<16x128xf32>
      %73 = arith.mulf %72, %71 : vector<16x128xf32>
      %cst_45 = arith.constant 9.99999974E-6 : f32
      %74 = vector.broadcast %cst_45 : f32 to vector<1x128xf32>
      %75 = arith.addf %68, %74 : vector<1x128xf32>
      %76 = math.rsqrt %75 : vector<1x128xf32>
      %77 = vector.broadcast %76 : vector<1x128xf32> to vector<16x128xf32>
      %78 = arith.mulf %73, %77 : vector<16x128xf32>
      %79 = vector.extract_strided_slice %9 {offsets = [4, 0], sizes = [1, 128], strides = [1, 1]} : vector<8x128xf32> to vector<1x128xf32>
      %80 = vector.broadcast %79 : vector<1x128xf32> to vector<16x128xf32>
      %81 = arith.addf %78, %80 : vector<16x128xf32>
      %82 = vector.broadcast %33 : vector<16x1xf32> to vector<16x128xf32>
      %83 = arith.mulf %81, %82 : vector<16x128xf32>
      %c0_46 = arith.constant 0 : index
      %c0_47 = arith.constant 0 : index
      %84 = vector.load %arg14[%c0_46, %c0_47] : memref<16x128xf32, #tpu.memory_space<vmem>>, vector<16x128xf32>
      tpu.vector_store %arg14[%c0_46, %c0_47], %83 {strides = array<i32>} : memref<16x128xf32, #tpu.memory_space<vmem>>, vector<16x128xf32>,
      %c0_48 = arith.constant 0 : index
      %c0_49 = arith.constant 0 : index
      %85 = vector.load %arg12[%c0_48, %c0_49] : memref<16x128xf32, #tpu.memory_space<vmem>>, vector<16x128xf32>
      tpu.vector_store %arg12[%c0_48, %c0_49], %83 {strides = array<i32>} : memref<16x128xf32, #tpu.memory_space<vmem>>, vector<16x128xf32>,
      %c0_50 = arith.constant 0 : index
      %c0_51 = arith.constant 0 : index
      %86 = vector.load %arg6[%c0_50, %c0_51] : memref<8x16xbf16, #tpu.memory_space<vmem>>, vector<8x16xbf16>
      %87 = arith.truncf %83 : vector<16x128xf32> to vector<16x128xbf16>
      %cst_52 = arith.constant dense<0.000000e+00> : vector<8x128xf32>
      %88 = tpu.matmul %86, %87, %cst_52 {dimension_numbers = #tpu.dot_dimension_numbers<[1], [0], [0], [1], [0, 0, 1, 1], [], []>} : vector<8x16xbf16>, vector<16x128xbf16>, vector<8x128xf32> -> vector<8x128xf32>
      %c0_53 = arith.constant 0 : index
      %c0_54 = arith.constant 0 : index
      %89 = vector.load %arg13[%c0_53, %c0_54] : memref<8x128xf32, #tpu.memory_space<vmem>>, vector<8x128xf32>
      tpu.vector_store %arg13[%c0_53, %c0_54], %88 {strides = array<i32>} : memref<8x128xf32, #tpu.memory_space<vmem>>, vector<8x128xf32>,
    } else {
    }
    return
  }
  func.func @transform_0(%arg0: i32, %arg1: i32) -> (i32, i32) {
    %c0_i32 = arith.constant 0 : i32
    %c0_i32_0 = arith.constant 0 : i32
    %c0_i32_1 = arith.constant 0 : i32
    return %c0_i32, %c0_i32_0 : i32, i32
  }
  func.func @transform_1(%arg0: i32, %arg1: i32) -> (i32, i32) {
    %c0_i32 = arith.constant 0 : i32
    %c0_i32_0 = arith.constant 0 : i32
    return %arg1, %c0_i32 : i32, i32
  }
  func.func @transform_2(%arg0: i32, %arg1: i32) -> (i32, i32) {
    %c0_i32 = arith.constant 0 : i32
    %c0_i32_0 = arith.constant 0 : i32
    return %arg1, %c0_i32 : i32, i32
  }
  func.func @transform_3(%arg0: i32, %arg1: i32) -> (i32, i32) {
    %c0_i32 = arith.constant 0 : i32
    %c0_i32_0 = arith.constant 0 : i32
    return %c0_i32, %arg1 : i32, i32
  }
  func.func @transform_4(%arg0: i32, %arg1: i32) -> (i32, i32) {
    %c0_i32 = arith.constant 0 : i32
    %c0_i32_0 = arith.constant 0 : i32
    %c0_i32_1 = arith.constant 0 : i32
    return %c0_i32, %c0_i32_0 : i32, i32
  }
  func.func @transform_5(%arg0: i32, %arg1: i32) -> (i32, i32) {
    %c0_i32 = arith.constant 0 : i32
    %c0_i32_0 = arith.constant 0 : i32
    %c0_i32_1 = arith.constant 0 : i32
    return %c0_i32, %c0_i32_0 : i32, i32
  }
  func.func @transform_6(%arg0: i32, %arg1: i32) -> (i32, i32, i32) {
    %c0_i32 = arith.constant 0 : i32
    %c0_i32_0 = arith.constant 0 : i32
    %c0_i32_1 = arith.constant 0 : i32
    return %arg0, %c0_i32, %c0_i32_0 : i32, i32, i32
  }
  func.func @transform_7(%arg0: i32, %arg1: i32) -> (i32, i32, i32) {
    %c0_i32 = arith.constant 0 : i32
    %c0_i32_0 = arith.constant 0 : i32
    %c0_i32_1 = arith.constant 0 : i32
    return %arg0, %c0_i32, %c0_i32_0 : i32, i32, i32
  }
  func.func @transform_8(%arg0: i32, %arg1: i32) -> (i32, i32, i32) {
    %c0_i32 = arith.constant 0 : i32
    %c0_i32_0 = arith.constant 0 : i32
    %c0_i32_1 = arith.constant 0 : i32
    return %arg0, %c0_i32, %c0_i32_0 : i32, i32, i32
  }
  func.func @transform_9(%arg0: i32, %arg1: i32) -> (i32, i32, i32) {
    %c0_i32 = arith.constant 0 : i32
    %c0_i32_0 = arith.constant 0 : i32
    %c0_i32_1 = arith.constant 0 : i32
    return %arg0, %c0_i32, %c0_i32_0 : i32, i32, i32
  }
  func.func @transform_10(%arg0: i32, %arg1: i32) -> (i32, i32) {
    %c0_i32 = arith.constant 0 : i32
    %c0_i32_0 = arith.constant 0 : i32
    return %c0_i32, %arg0 : i32, i32
  }
  func.func @transform_11(%arg0: i32, %arg1: i32) -> (i32, i32) {
    %c0_i32 = arith.constant 0 : i32
    %c0_i32_0 = arith.constant 0 : i32
    return %c0_i32, %arg0 : i32, i32
  }
}

</mosaic_0001>

<bundles_post_ra>
// kernel: gconv_forward.1
= control target key start
LH: loop header
LB: loop body
LE: loop exit
PB: predicated region body
PF: predicated region fallthrough
CT: control target
= control target key end

     0   :  { %s2017_s17 = smov 0   ;;  %s2019_s18 = smov 0   ;;  %s2301_s0 = inlined_call_operand.vmem [shape: f32[16,128], index: 0, kind: input, shape index: {}]   ;;  %s2302_s1 = inlined_call_operand.vmem [shape: bf16[128,128], index: 1, kind: input, shape index: {}]   ;;  %s2303_s2 = inlined_call_operand.vmem [shape: bf16[128,16], index: 2, kind: input, shape index: {}]   ;;  %s2304_s3 = inlined_call_operand.vmem [shape: bf16[16,128], index: 3, kind: input, shape index: {}]   ;;  %s2305_s4 = inlined_call_operand.vmem [shape: bf16[8,16], index: 4, kind: input, shape index: {}]   ;;  %s2306_s5 = inlined_call_operand.vmem [shape: f32[16,1], index: 5, kind: input, shape index: {}]   ;;  %s2307_s6 = inlined_call_operand.vmem [shape: bf16[3,128,128], index: 6, kind: input, shape index: {}]   ;;  %s2308_s7 = inlined_call_operand.vmem [shape: bf16[3,128,128], index: 7, kind: input, shape index: {}]   ;;  %s2309_s8 = inlined_call_operand.vmem [shape: bf16[3,128,128], index: 8, kind: input, shape index: {}]   ;;  %s2310_s9 = inlined_call_operand.vmem [shape: f32[3,8,128], index: 9, kind: input, shape index: {}]   ;;  %s2311_s10 = inlined_call_operand.vmem [shape: f32[16,384], index: 10, kind: output, shape index: {0}]   ;;  %s2312_s11 = inlined_call_operand.vmem [shape: f32[8,384], index: 11, kind: output, shape index: {1}]  }
   0x1   :  { %s2021_s19 = smov 0   ;;  %s2023_s20 = smov 0  }
   0x2   :  { %s2025_s21 = smov 0  }
   0x3 LB: > { %2317 = sst [smem:[#allocation5_spill]] %s1940_s18  ;;  %s1581_s22 = sadd.s32 4294967295, %s1952_s21   ;;  %s1952_s21 = sphi %s2025_s21, %s22_s21   ;;  %s1948_s20 = sphi %s2023_s20, %s2327_s20   ;;  %s1944_s19 = sphi %s2021_s19, %s2326_s19   ;;  %s1940_s18 = sphi %s2019_s18, %s2325_s18   ;;  %s1936_s17 = sphi %s2017_s17, %s2324_s17  }
   0x4   : > { %2318 = sst [smem:[#allocation6_spill]] %s1948_s20  ;;  %s34_s23 = sadd.s32 1, %s1948_s20 }
   0x5   : > { %2319 = sst [smem:[#allocation7_spill]] %s1952_s21  ;;  %p36_p0 = scmp.ge.s32.totalorder %s34_s23, 3 }
   0x6   : > { %s286_s24 = sadd.s32 1, %s1940_s18  ;;  %p296_p1 = scmp.ne.s32.totalorder %s1940_s18, %s1936_s17 }
   0x7   : > { %p297_p2 = scmp.eq.s32.totalorder %s1581_s22, 2  ;;  %s2329_s23 = smov (%p36_p0, %s34_s23), 0 }
   0x8   : > { %2320 = sst [smem:[#allocation8_spill]] %s2329_s23  ;;  %p1588_p4 = scmp.ge.s32.totalorder %s1952_s21, 1 }
   0x9   : > { %p2046_p3 = por %p297_p2, %p296_p1  ;;  %s283_s26 = ssub.s32 %s1948_s20, %s2329_s23 }
   0xa   : > { %p412_p5 = scmp.lt.s32.totalorder %s1952_s21, 4  ;;  %p284_p6 = scmp.eq.s32.totalorder %s283_s26, 0 }
   0xc   : > { %p413_p7 = pnand %p1588_p4, %p412_p5 }
   0xd   : > { %s2055_s27 = scalar_select %p284_p6, %s1940_s18, %s286_s24  }
   0xe   : > { %416 = sbr.rel (%p413_p7) target bundleno = 1173 (0x495), region = 60  ;;  %s474_s28 = sand.u32 (!%p413_p7), 1, %s1936_s17  }
   0xf   : > { %2322 = sst [smem:[#allocation9_spill]] %s2055_s27  ;;  %p499_p8 = scmp.lt.s32.totalorder (!%p413_p7), %s1944_s19, 2 }
  0x10   : > { %s1589_s29 = sshll.u32 (!%p413_p7), %s474_s28, 4  ;;  %p523_p9 = scmp.eq.s32.totalorder (!%p413_p7), %s1944_s19, 0 }
  0x11   : > { %s2085_s15 = scalar_lea.vmem (!%p413_p7), [#allocation4], %s1589_s29 }
  0x13   : > { %s500_s30 = scalar_select %p499_p8, %s1944_s19, 2  ;;  %v529_v0 = vld [vmem:[%s2301_s0] sm:$0xff] (%p523_p9)  ;;  %v530_v1 = vld [vmem:[%s2301_s0 + $0x8] sm:$0xff] (%p523_p9) }
  0x14   : > { %528 = sbr.rel (!%p523_p9) target bundleno = 25 (0x19), region = 64  ;;  %531 = vst [vmem:[#allocation2] sm:$0xff] (%p523_p9), %v529_v0  ;;  %532 = vst [vmem:[#allocation2 + $0x8] sm:$0xff] (%p523_p9), %v530_v1 }
  0x15   : > { %s1653_s12 = sshll.u32 %s500_s30, 6  ;;  %s1596_s13 = sshll.u32 %s500_s30, 3 }
  0x16   : > { %s2063_s16 = scalar_lea.vmem %s2307_s6, %s1653_s12  ;;  %s2068_s24 = scalar_lea.vmem %s2308_s7, %s1653_s12 }
  0x17   : > { %s2073_s20 = scalar_lea.vmem %s2309_s8, %s1653_s12  ;;  %s2078_s18 = scalar_lea.vmem %s2310_s9, %s1596_s13 }
  0x18   : > { %s2083_s14 = scalar_lea.vmem %s2312_s11, %s1596_s13 }
  0x19 PF: > { %v1871_v2 = vld [vmem:[%s2063_s16 + $0x38] sm:$0xff]   ;;  %v1872_v3 = vld [vmem:[%s2063_s16 + $0x30] sm:$0xff]   ;;  %v1873_v4 = vld [vmem:[%s2063_s16 + $0x28] sm:$0xff]   ;;  %vm827_vm0 = vcmask 130048   ;;  %v1954_v29 = vmov 0.0   ;;  %vm1955_vm1 = vmmov 0   ;;  %v574_v52 = vlaneseq }
  0x1a   : > { %1711 = vmatprep.subr.bf16.mxu0 %v1871_v2  ;;  %v1874_v5 = vld [vmem:[%s2063_s16 + $0x20] sm:$0xff]   ;;  %v1880_v10 = vld [vmem:[%s2303_s2 + $0x8] sm:$0xff]   ;;  %v1875_v12 = vld [vmem:[%s2063_s16 + $0x18] sm:$0xff]   ;;  %s1650_s29 = sshll.u32 (%p2046_p3), %s1944_s19, 3 }
  0x1b   : > { %1712 = vmatpush3.bf16.msra.mxu0 %v1871_v2  ;;  %v2097_v6 = vld [vmem:[#allocation2] sm:$0xff]  ;;  %v2099_v7 = vld [vmem:[#allocation2 + $0x8] sm:$0xff]  ;;  %v1883_v13 = vld [vmem:[%s2303_s2 + $0x10] sm:$0xff]   ;;  %v2203_v56 = vshrl.u32 %v574_v52, 7  ;;  %s1376_s28 = scalar_lea.vmem (%p2046_p3), %s2311_s10, %s1650_s29 }
  0x1c   : > { %1713 = vmatprep.subr.bf16.mxu0 %v1872_v3  ;;  %v541_v8 = vpack.c.bf16 %v2099_v7, %v2097_v6  ;;  %v1878_v9 = vld [vmem:[%s2303_s2] sm:$0xff]   ;;  %v1876_v14 = vld [vmem:[%s2063_s16 + $0x10] sm:$0xff]   ;;  %v1884_v15 = vld [vmem:[%s2303_s2 + $0x18] sm:$0xff]  }
  0x1d   : > { %1745 = vmatprep.mubr.msk.bf16.mxu1 %vm827_vm0, %v1878_v9  ;;  %v1881_v11 = vld [vmem:[%s2302_s1] sm:$0xff]   ;;  %v1877_v17 = vld [vmem:[%s2063_s16 + $0x8] sm:$0xff]   ;;  %v1891_v20 = vld [vmem:[%s2303_s2 + $0x30] sm:$0xff]   ;;  %v576_v60 = vsub.s32 0, %v2203_v56 }
  0x1e   : > { %1743 = vmatprep.subr.bf16.mxu1 %v541_v8  ;;  %1727 = vmatprep.mubr.bf16.mxu0 %v1881_v11  ;;  %v1887_v16 = vld [vmem:[%s2303_s2 + $0x20] sm:$0xff]   ;;  %v1888_v19 = vld [vmem:[%s2303_s2 + $0x28] sm:$0xff]   ;;  %v1885_v22 = vld [vmem:[%s2302_s1 + $0x10] sm:$0xff]  }
  0x1f   : > { %1714 = vmatpush3.bf16.msra.mxu0 %v1872_v3  ;;  %1744 = vmatpush3.bf16.msra.mxu1 %v541_v8  ;;  %v1879_v18 = vld [vmem:[%s2063_s16] sm:$0xff]   ;;  %v1882_v21 = vld [vmem:[%s2302_s1 + $0x8] sm:$0xff]   ;;  %v1892_v23 = vld [vmem:[%s2303_s2 + $0x38] sm:$0xff]  }
  0x20   : > { %1715 = vmatprep.subr.bf16.mxu0 %v1873_v4  ;;  %v1886_v24 = vld [vmem:[%s2302_s1 + $0x18] sm:$0xff]   ;;  %v1889_v25 = vld [vmem:[%s2302_s1 + $0x20] sm:$0xff]   ;;  %v1890_v26 = vld [vmem:[%s2302_s1 + $0x28] sm:$0xff]   ;;  %1761 = vmatprep.subr.bf16.mxu1 %v1954_v29 }
  0x21   : > { %v1893_v27 = vld [vmem:[%s2302_s1 + $0x30] sm:$0xff]   ;;  %v1894_v28 = vld [vmem:[%s2302_s1 + $0x38] sm:$0xff]   ;;  %v1898_v32 = vld [vmem:[%s2068_s24 + $0x28] sm:$0xff]  }
  0x22   : > { %1746 = vmatmul.mubr.msk.bf16.vlgmr.msra.gmra.mxu1 %vm827_vm0, %v1880_v10  ;;  %v1896_v30 = vld [vmem:[%s2068_s24 + $0x38] sm:$0xff]   ;;  %v1897_v31 = vld [vmem:[%s2068_s24 + $0x30] sm:$0xff]   ;;  %v1899_v33 = vld [vmem:[%s2068_s24 + $0x20] sm:$0xff]  }
  0x23   : > { %1716 = vmatpush3.bf16.msra.mxu0 %v1873_v4  ;;  %1749 = vmatprep.mubr.msk.bf16.mxu1 %vm827_vm0, %v1883_v13  ;;  %v1900_v34 = vld [vmem:[%s2068_s24 + $0x18] sm:$0xff]   ;;  %v1901_v35 = vld [vmem:[%s2068_s24 + $0x10] sm:$0xff]   ;;  %v2207_v61 = vld [vmem:[%s2078_s18] sm:$0xff] }
  0x24   : > { %1717 = vmatprep.subr.bf16.mxu0 %v1874_v5  ;;  %v577_v1 = vrot.slane %v2207_v61, %v576_v60 }
  0x27   : > { %1718 = vmatpush3.bf16.msra.mxu0 %v1874_v5 }
  0x28   : > { %1719 = vmatprep.subr.bf16.mxu0 %v1875_v12 }
  0x2a   : > { %1750 = vmatmul.mubr.msk.bf16.gmra.mxu1 %vm827_vm0, %v1884_v15 }
  0x2b   : > { %1720 = vmatpush3.bf16.msra.mxu0 %v1875_v12  ;;  %1753 = vmatprep.mubr.msk.bf16.mxu1 %vm827_vm0, %v1887_v16 }
  0x2c   : > { %1721 = vmatprep.subr.bf16.mxu0 %v1876_v14 }
  0x2f   : > { %1722 = vmatpush3.bf16.msra.mxu0 %v1876_v14 }
  0x30   : > { %1723 = vmatprep.subr.bf16.mxu0 %v1877_v17 }
  0x32   : > { %1754 = vmatmul.mubr.msk.bf16.gmra.mxu1 %vm827_vm0, %v1888_v19 }
  0x33   : > { %1724 = vmatpush3.bf16.msra.mxu0 %v1877_v17  ;;  %1757 = vmatprep.mubr.msk.bf16.mxu1 %vm827_vm0, %v1891_v20 }
  0x34   : > { %1725 = vmatprep.subr.bf16.mxu0 %v1879_v18 }
  0x37   : > { %1726 = vmatpush3.bf16.msra.mxu0 %v1879_v18 }
  0x38   : > { %1781 = vmatprep.subr.bf16.mxu0 %v1954_v29 }
  0x3a   : > { %1728 = vmatmul.mubr.bf16.vlgmr.msra.gmra.mxu0 %v1882_v21  ;;  %1758 = vmatmul.mubr.msk.bf16.gmra.mxu1 %vm827_vm0, %v1892_v23 }
  0x3b   : > { %1731 = vmatprep.mubr.bf16.mxu0 %v1885_v22  ;;  %1777 = vmatprep.mubr.msk.bf16.mxu1 %vm1955_vm1, %v1954_v29 }
  0x3c   : > { %1782 = vmatpush3.bf16.msra.mxu0 %v1896_v30 }
  0x3d   : > { %1783 = vmatprep.subr.bf16.mxu0 %v1954_v29 }
  0x40   : > { %1784 = vmatpush3.bf16.msra.mxu0 %v1897_v31 }
  0x41   : > { %1785 = vmatprep.subr.bf16.mxu0 %v1954_v29 }
  0x42   : > { %1732 = vmatmul.mubr.bf16.gmra.mxu0 %v1886_v24 }
  0x43   : > { %1735 = vmatprep.mubr.bf16.mxu0 %v1889_v25 }
  0x44   : > { %1786 = vmatpush3.bf16.msra.mxu0 %v1898_v32 }
  0x45   : > { %1787 = vmatprep.subr.bf16.mxu0 %v1954_v29 }
  0x48   : > { %1788 = vmatpush3.bf16.msra.mxu0 %v1899_v33 }
  0x49   : > { %1789 = vmatprep.subr.bf16.mxu0 %v1954_v29 }
  0x4a   : > { %1736 = vmatmul.mubr.bf16.gmra.mxu0 %v1890_v26 }
  0x4b   : > { %1739 = vmatprep.mubr.bf16.mxu0 %v1893_v27 }
  0x4c   : > { %1790 = vmatpush3.bf16.msra.mxu0 %v1900_v34 }
  0x4d   : > { %1791 = vmatprep.subr.bf16.mxu0 %v1954_v29 }
  0x50   : > { %1792 = vmatpush3.bf16.msra.mxu0 %v1901_v35 }
  0x51   : > { %1793 = vmatprep.subr.bf16.mxu0 %v1954_v29 }
  0x52   : > { %1740 = vmatmul.mubr.bf16.gmra.mxu0 %v1894_v28 }
  0x53   : > { %1797 = vmatprep.mubr.msk.bf16.mxu0 %vm1955_vm1, %v1954_v29 }
  0xe2   : > { %v2181_v36 = vpop.f32.mrf.mxu1 }
  0xe4   : > { %v2183_v37 = vpop.f32.mrf.mxu1 }
  0xe6   : > { %v2185_v38 = vpop.f32.mrf.mxu1 }
  0xe8   : > { %v2187_v39 = vpop.f32.mrf.mxu1 }
  0xea   : > { %v2189_v40 = vpop.f32.mrf.mxu1 }
  0xec   : > { %v2191_v41 = vpop.f32.mrf.mxu1 }
  0xee   : > { %v1752_v42 = vpop.f32.mrf.mxu1 }
  0xf0   : > { %v2195_v44 = vpop.f32.mrf.mxu1 }
  0xf2   : > { %v1755_v47 = vpop.f32.mrf.mxu1 }
  0xf4   : > { %v918_v50 = vpop.f32.mrf.mxu1 }
  0xf6   : > { %v1756_v54 = vpop.f32.mrf.mxu1 }
  0xf8   : > { %v921_v58 = vpop.f32.mrf.mxu1 }
  0xfa   : > { %v2193_v43 = vpop.f32.mrf.mxu0  ;;  %v1759_v63 = vpop.f32.mrf.mxu1 }
  0xfc   : > { %v2197_v45 = vpop.f32.mrf.mxu0  ;;  %v934_v2 = vpop.f32.mrf.mxu1 }
  0xfe   : > { %v2199_v46 = vpop.f32.mrf.mxu0  ;;  %v1760_v8 = vpop.f32.mrf.mxu1 }
 0x100   : > { %v2201_v48 = vpop.f32.mrf.mxu0  ;;  %v937_v18 = vpop.f32.mrf.mxu1 }
 0x102   : > { %v1733_v49 = vpop.f32.mrf.mxu0 }
 0x103   : > { %v733_v35 = vadd.f32 %v1733_v49, %v577_v1 }
 0x104   : > { %v724_v51 = vpop.f32.mrf.mxu0 }
 0x106   : > { %v1734_v53 = vpop.f32.mrf.mxu0 }
 0x107   : > { %v736_v31 = vadd.f32 %v1734_v53, %v577_v1  ;;  %v720_v53 = vadd.f32 %v2199_v46, %v577_v1 }
 0x108   : > { %v727_v55 = vpop.f32.mrf.mxu0 }
 0x109   : > { %v728_v60 = vadd.f32 %v727_v55, %v577_v1 }
 0x10a   : > { %v1737_v57 = vpop.f32.mrf.mxu0 }
 0x10b   : > { %v749_v17 = vadd.f32 %v1737_v57, %v577_v1  ;;  %v906_v49 = vadd.f32 %v2195_v44, %v728_v60 }
 0x10c   : > { %v740_v59 = vpop.f32.mrf.mxu0 }
 0x10d   : > { %v927_v27 = vadd.f32 %v1755_v47, %v749_v17  ;;  %v741_v28 = vadd.f32 %v740_v59, %v577_v1  ;;  %v911_v47 = vadd.f32 %v2189_v40, %v733_v35  ;;  %v725_v59 = vadd.f32 %v724_v51, %v577_v1 }
 0x10e   : > { %v1738_v62 = vpop.f32.mrf.mxu0  ;;  %v898_v40 = vadd.f32 %v2185_v38, %v720_v53  ;;  %v712_v51 = vadd.f32 %v2201_v48, %v577_v1 }
 0x10f   : > { %v752_v14 = vadd.f32 %v1738_v62, %v577_v1  ;;  %v959_v52 = vmax.f32 %v927_v27, 0.0  ;;  %v919_v57 = vadd.f32 %v918_v50, %v741_v28  ;;  %v1056_v27 = vsub.s32 1, %v2203_v56 }
 0x110   : > { %v743_v0 = vpop.f32.mrf.mxu0 }
 0x111   : > { %v930_v23 = vadd.f32 %v1756_v54, %v752_v14  ;;  %v744_v24 = vadd.f32 %v743_v0, %v577_v1  ;;  %v914_v54 = vadd.f32 %v1752_v42, %v736_v31  ;;  %v957_v0 = vmax.f32 %v919_v57, 0.0  ;;  %v1907_v14 = vld [vmem:[%s2073_s20 + $0x20] sm:$0xff]  }
 0x112   : > { %v1741_v3 = vpop.f32.mrf.mxu0  ;;  %v903_v42 = vadd.f32 %v2191_v41, %v725_v59  ;;  %v890_v41 = vadd.f32 %v2187_v39, %v712_v51  ;;  %v1895_v39 = vld [vmem:[%s2304_s3] sm:$0xff]   ;;  %v1057_v28 = vrot.slane %v2207_v61, %v1056_v27 }
 0x113   : > { %v765_v4 = vadd.f32 %v1741_v3, %v577_v1  ;;  %v960_v32 = vmax.f32 %v930_v23, 0.0  ;;  %v922_v33 = vadd.f32 %v921_v58, %v744_v24  ;;  %v956_v58 = vmax.f32 %v914_v54, 0.0  ;;  %v1909_v23 = vld [vmem:[%s2073_s20 + $0x10] sm:$0xff]   ;;  %v1910_v24 = vld [vmem:[%s2073_s20 + $0x8] sm:$0xff]  }
 0x114   : > { %v756_v5 = vpop.f32.mrf.mxu0  ;;  %v955_v3 = vmax.f32 %v911_v47, 0.0  ;;  %v953_v44 = vmax.f32 %v903_v42, 0.0  ;;  %v1168_v54 = vsub.s32 2, %v2203_v56 }
 0x115   : > { %v943_v10 = vadd.f32 %v1759_v63, %v765_v4  ;;  %v757_v11 = vadd.f32 %v756_v5, %v577_v1  ;;  %v974_v62 = vpack.c.bf16 %v960_v32, %v959_v52  ;;  %v958_v63 = vmax.f32 %v922_v33, 0.0 }
 0x116   : > { %v1742_v9 = vpop.f32.mrf.mxu0  ;;  %v972_v55 = vpack.c.bf16 %v956_v58, %v955_v3  ;;  %v954_v4 = vmax.f32 %v906_v49, 0.0  ;;  %v709_v5 = vadd.f32 %v2197_v45, %v577_v1  ;;  %v1169_v60 = vrot.slane %v2207_v61, %v1168_v54 }
 0x117   : > { %v768_v12 = vadd.f32 %v1742_v9, %v577_v1  ;;  %v963_v19 = vmax.f32 %v943_v10, 0.0  ;;  %v935_v20 = vadd.f32 %v934_v2, %v757_v11  ;;  %v973_v50 = vpack.c.bf16 %v958_v63, %v957_v0  ;;  %v1903_v10 = vld [vmem:[%s2068_s24] sm:$0xff]   ;;  %v1904_v11 = vld [vmem:[%s2073_s20 + $0x38] sm:$0xff]  }
 0x118   : > { %v759_v13 = vpop.f32.mrf.mxu0  ;;  %v717_v2 = vadd.f32 %v2193_v43, %v577_v1  ;;  %v952_v43 = vmax.f32 %v898_v40, 0.0  ;;  %v887_v38 = vadd.f32 %v2183_v37, %v709_v5  ;;  %v1902_v37 = vld [vmem:[%s2068_s24 + $0x8] sm:$0xff]  }
 0x119   : > { %v946_v15 = vadd.f32 %v1760_v8, %v768_v12  ;;  %v760_v16 = vadd.f32 %v759_v13, %v577_v1  ;;  %v961_v30 = vmax.f32 %v935_v20, 0.0  ;;  %v971_v8 = vpack.c.bf16 %v954_v4, %v953_v44  ;;  %1794 = vmatpush3.bf16.msra.mxu0 %v1902_v37  ;;  %v1905_v12 = vld [vmem:[%s2073_s20 + $0x30] sm:$0xff]   ;;  %v1906_v13 = vld [vmem:[%s2073_s20 + $0x28] sm:$0xff]  }
 0x11a   : > { %v895_v46 = vadd.f32 %v2181_v36, %v717_v2  ;;  %v950_v36 = vmax.f32 %v890_v41, 0.0  ;;  %v949_v45 = vmax.f32 %v887_v38, 0.0  ;;  %1795 = vmatprep.subr.bf16.mxu0 %v1954_v29 }
 0x11b   : > { %v964_v21 = vmax.f32 %v946_v15, 0.0  ;;  %v938_v22 = vadd.f32 %v937_v18, %v760_v16  ;;  %v1908_v15 = vld [vmem:[%s2073_s20 + $0x18] sm:$0xff]  }
 0x11c   : > { %v951_v9 = vmax.f32 %v895_v46, 0.0  ;;  %v969_v1 = vpack.c.bf16 %v950_v36, %v949_v45 }
 0x11d   : > { %v976_v25 = vpack.c.bf16 %v964_v21, %v963_v19  ;;  %v962_v26 = vmax.f32 %v938_v22, 0.0  ;;  %1796 = vmatpush3.bf16.msra.mxu0 %v1903_v10 }
 0x11e   : > { %v970_v48 = vpack.c.bf16 %v952_v43, %v951_v9  ;;  %1821 = vmatprep.subr.bf16.mxu0 %v1954_v29 }
 0x11f   : > { %1762 = vmatpush3.bf16.msra.mxu1 %v976_v25  ;;  %v975_v34 = vpack.c.bf16 %v962_v26, %v961_v30  ;;  %v1911_v25 = vld [vmem:[%s2073_s20] sm:$0xff]   ;;  %v1032_v26 = vld [vmem:[%s2306_s5 + $0x8] sm:$0xff] }
 0x120   : > { %1763 = vmatprep.subr.bf16.mxu1 %v1954_v29 }
 0x123   : > { %1764 = vmatpush3.bf16.msra.mxu1 %v975_v34 }
 0x124   : > { %1765 = vmatprep.subr.bf16.mxu1 %v1954_v29 }
 0x127   : > { %1766 = vmatpush3.bf16.msra.mxu1 %v974_v62 }
 0x128   : > { %1767 = vmatprep.subr.bf16.mxu1 %v1954_v29 }
 0x12b   : > { %1768 = vmatpush3.bf16.msra.mxu1 %v973_v50 }
 0x12c   : > { %1769 = vmatprep.subr.bf16.mxu1 %v1954_v29 }
 0x12f   : > { %1770 = vmatpush3.bf16.msra.mxu1 %v972_v55 }
 0x130   : > { %1771 = vmatprep.subr.bf16.mxu1 %v1954_v29 }
 0x133   : > { %1772 = vmatpush3.bf16.msra.mxu1 %v971_v8 }
 0x134   : > { %1773 = vmatprep.subr.bf16.mxu1 %v1954_v29 }
 0x137   : > { %1774 = vmatpush3.bf16.msra.mxu1 %v970_v48 }
 0x138   : > { %1775 = vmatprep.subr.bf16.mxu1 %v1954_v29 }
 0x13b   : > { %1776 = vmatpush3.bf16.msra.mxu1 %v969_v1 }
 0x13c   : > { %1801 = vmatprep.subr.bf16.mxu1 %v1954_v29 }
 0x13e   : > { %1778 = vmatmul.mubr.bf16.vlgmr.msra.gmra.mxu1 %v1895_v39 }
 0x13f   : > { %1817 = vmatprep.mubr.msk.bf16.mxu1 %vm1955_vm1, %v1954_v29  ;;  %1802 = vmatpush3.bf16.msra.mxu1 %v1904_v11 }
 0x140   : > { %1803 = vmatprep.subr.bf16.mxu1 %v1954_v29 }
 0x143   : > { %1804 = vmatpush3.bf16.msra.mxu1 %v1905_v12 }
 0x144   : > { %1805 = vmatprep.subr.bf16.mxu1 %v1954_v29 }
 0x147   : > { %1806 = vmatpush3.bf16.msra.mxu1 %v1906_v13 }
 0x148   : > { %1807 = vmatprep.subr.bf16.mxu1 %v1954_v29 }
 0x14b   : > { %1808 = vmatpush3.bf16.msra.mxu1 %v1907_v14  ;;  %v1298_v14 = vsub.s32 3, %v2203_v56 }
 0x14c   : > { %1809 = vmatprep.subr.bf16.mxu1 %v1954_v29 }
 0x14f   : > { %1810 = vmatpush3.bf16.msra.mxu1 %v1908_v15 }
 0x150   : > { %1811 = vmatprep.subr.bf16.mxu1 %v1954_v29 }
 0x153   : > { %1812 = vmatpush3.bf16.msra.mxu1 %v1909_v23 }
 0x154   : > { %1813 = vmatprep.subr.bf16.mxu1 %v1954_v29 }
 0x157   : > { %1814 = vmatpush3.bf16.msra.mxu1 %v1910_v24 }
 0x158   : > { %1815 = vmatprep.subr.bf16.mxu1 %v1954_v29 }
 0x15b   : > { %1816 = vmatpush3.bf16.msra.mxu1 %v1911_v25 }
 0x1fe   : > { %v1017_v16 = vpop.f32.mrf.mxu1 }
 0x1ff   : > { %v1035_v19 = vadd.f32 %v1017_v16, %v2097_v6  ;;  %v1031_v6 = vld [vmem:[%s2306_s5] sm:$0xff] }
 0x200   : > { %v1779_v17 = vpop.f32.mrf.mxu1 }
 0x201   : > { %v1299_v17 = vrot.slane %v2207_v61, %v1298_v14 }
 0x202   : > { %v1020_v18 = vpop.f32.mrf.mxu1 }
 0x203   : > { %v1036_v20 = vadd.f32 %v1020_v18, %v2099_v7  ;;  %v1956_v7 = vmov 0   ;;  %v1308_v18 = vsub.s32 4, %v2203_v56  ;;  %v1318_v56 = vld [vmem:[%s2305_s4] sm:$0xf] }
 0x204   : > { %v1780_v21 = vpop.f32.mrf.mxu1  ;;  %1870 = vset.pattern.permute.xlu0 %v1956_v7 }
 0x205   : > { %v1037_v22 = vpack.c.bf16 %v1036_v20, %v1035_v19  ;;  %1263 = vperm.xlu0 %1870, %v1031_v6   ;;  %v1309_v21 = vrot.slane %v2207_v61, %v1308_v18 }
 0x207   : > { %1798 = vmatmul.mubr.bf16.vlgmr.msra.gmra.mxu0 %v1037_v22 }
 0x208   : > { %1823 = vmatprep.mubr.msk.bf16.mxu0 %vm1955_vm1, %v1954_v29 }
 0x209   : > { %1268 = vperm.xlu0 %1870, %v1032_v26  }
 0x280   : > { %v1264_v47 = vpop.permute.xlu0 %1263 }
 0x284   : > { %v1269_v3 = vpop.permute.xlu0 %1268 }
 0x2c7   : > { %v1140_v30 = vpop.f32.mrf.mxu0 }
 0x2c8   : > { %v1141_v31 = vadd.f32 %v1140_v30, %v1057_v28 }
 0x2c9   : > { %v1799_v29 = vpop.f32.mrf.mxu0 }
 0x2ca   : > { %v1147_v35 = vmax.f32 %v1141_v31, 0.0 }
 0x2cb   : > { %v1143_v32 = vpop.f32.mrf.mxu0 }
 0x2cc   : > { %v1144_v33 = vadd.f32 %v1143_v32, %v1057_v28 }
 0x2cd   : > { %v1800_v34 = vpop.f32.mrf.mxu0 }
 0x2ce   : > { %v1148_v52 = vmax.f32 %v1144_v33, 0.0 }
 0x2d0   : > { %v1149_v57 = vpack.c.bf16 %v1148_v52, %v1147_v35 }
 0x2d2   : > { %1818 = vmatmul.mubr.bf16.vlgmr.msra.gmra.mxu1 %v1149_v57 }
 0x392   : > { %v1252_v62 = vpop.f32.mrf.mxu1 }
 0x393   : > { %v1253_v63 = vadd.f32 %v1252_v62, %v1169_v60 }
 0x394   : > { %v1819_v59 = vpop.f32.mrf.mxu1 }
 0x395   : > { %v1259_v0 = vmax.f32 %v1253_v63, 0.0 }
 0x396   : > { %v1255_v53 = vpop.f32.mrf.mxu1 }
 0x397   : > { %v1256_v58 = vadd.f32 %v1255_v53, %v1169_v60  ;;  %v1271_v50 = vmul.f32 %v1264_v47, %v1259_v0 }
 0x398   : > { %v1820_v49 = vpop.f32.mrf.mxu1 }
 0x399   : > { %v1260_v2 = vmax.f32 %v1256_v58, 0.0  ;;  %v1281_v40 = vmul.f32 %v1271_v50, %v1271_v50 }
 0x39b   : > { %v1272_v42 = vmul.f32 %v1269_v3, %v1260_v2 }
 0x39d   : > { %v1273_v51 = vadd.f32 %v1272_v42, %v1271_v50  ;;  %v1282_v55 = vmul.f32 %v1272_v42, %v1272_v42 }
 0x39f   : > { %v1274_v4 = vrot.slane %v1273_v51, 4  ;;  %v1283_v46 = vadd.f32 %v1282_v55, %v1281_v40 }
 0x3a1   : > { %v1275_v5 = vadd.f32 %v1274_v4, %v1273_v51  ;;  %v1284_v44 = vrot.slane %v1283_v46, 4 }
 0x3a3   : > { %v1276_v43 = vrot.slane %v1275_v5, 2  ;;  %v1285_v41 = vadd.f32 %v1284_v44, %v1283_v46 }
 0x3a5   : > { %v1277_v8 = vadd.f32 %v1276_v43, %v1275_v5  ;;  %v1286_v9 = vrot.slane %v1285_v41, 2 }
 0x3a7   : > { %v1278_v38 = vrot.slane %v1277_v8, 1  ;;  %v1287_v48 = vadd.f32 %v1286_v9, %v1285_v41 }
 0x3a9   : > { %v1279_v36 = vadd.f32 %v1278_v38, %v1277_v8  ;;  %v1288_v45 = vrot.slane %v1287_v48, 1 }
 0x3ab   : > { %v1280_v1 = vmul.f32 0.0625, %v1279_v36  ;;  %v1289_v39 = vadd.f32 %v1288_v45, %v1287_v48 }
 0x3ad   : > { %v1290_v37 = vmul.f32 0.0625, %v1289_v39  ;;  %v1291_v10 = vmul.f32 %v1280_v1, %v1280_v1  ;;  %v1294_v15 = vsub.f32 %v1271_v50, %v1280_v1  ;;  %v1295_v16 = vsub.f32 %v1272_v42, %v1280_v1 }
 0x3af   : > { %v1292_v11 = vsub.f32 %v1290_v37, %v1291_v10  ;;  %v1300_v19 = vmul.f32 %v1299_v17, %v1294_v15  ;;  %v1301_v20 = vmul.f32 %v1299_v17, %v1295_v16 }
 0x3b1   : > { %v1293_v12 = vmax.f32 %v1292_v11, 0.0 }
 0x3b3   : > { %v1302_v13 = vadd.f32 1e-05, %v1293_v12 }
 0x3b5   : > { %1912 = vrsqrt.f32 %v1302_v13 }
 0x3c2   : > { %v1913_v22 = vpop.eup %1912 }
 0x3c3   : > { %v1304_v23 = vmul.f32 %v1913_v22, %v1300_v19  ;;  %v1305_v24 = vmul.f32 %v1913_v22, %v1301_v20 }
 0x3c5   : > { %v1311_v25 = vadd.f32 %v1309_v21, %v1305_v24  ;;  %v1310_v6 = vadd.f32 %v1309_v21, %v1304_v23 }
 0x3c7   : > { %v1312_v7 = vmul.f32 %v1310_v6, %v1264_v47  ;;  %v1313_v26 = vmul.f32 %v1311_v25, %v1269_v3 }
 0x3c9   : > { %1314 = vst [vmem:[#allocation2] sm:$0xff] %v1312_v7  ;;  %1315 = vst [vmem:[#allocation2 + $0x8] sm:$0xff] %v1313_v26  ;;  %v1319_v27 = vpack.c.bf16 %v1313_v26, %v1312_v7 }
 0x3ca   : > { %1316 = vst [vmem:[%s2085_s15] sm:$0xff] %v1312_v7  ;;  %1317 = vst [vmem:[%s2085_s15 + $0x8] sm:$0xff] %v1313_v26 }
 0x3cb   : > { %1822 = vmatpush3.bf16.msra.mxu0 %v1319_v27 }
 0x3ce   : > { %1824 = vmatmul.mubr.msk.bf16.vlgmr.msra.gmra.mxu0 %vm827_vm0, %v1318_v56 }
 0x3d1   : > { %v1407_v31 = vld [vmem:[%s2085_s15] sm:$0xff] (%p2046_p3)  ;;  %v1409_v32 = vld [vmem:[%s2085_s15 + $0x8] sm:$0xff] (%p2046_p3) }
 0x3d2   : > { %1408 = vst [vmem:[%s1376_s28] sm:$0xff] (%p2046_p3), %v1407_v31  ;;  %1410 = vst [vmem:[%s1376_s28 + $0x18] sm:$0xff] (%p2046_p3), %v1409_v32 }
 0x48e   : > { %v1357_v61 = vpop.f32.mrf.mxu0 }
 0x48f   : > { %1363 = vst [vmem:[%s2083_s14] sm:$0xff] %v1357_v61 }
 0x490   : > { %v1825_v28 = vpop.f32.mrf.mxu0  ;;  %1374 = sbr.rel (!%p2046_p3) target bundleno = 1173 (0x495), region = 76 }
 0x492   : > { %v1360_v30 = vpop.f32.mrf.mxu0 }
 0x494   : > { %v1826_v29 = vpop.f32.mrf.mxu0 }
 0x495 PF: > { %s2323_s14 = sld [smem:[#allocation7_spill]] }
 0x496   : > { %s2324_s17 = sld [smem:[#allocation5_spill]] }
 0x497   : > { %s2325_s18 = sld [smem:[#allocation9_spill]] }
 0x498   : > { %s2326_s19 = sld [smem:[#allocation6_spill]] }
 0x499   : > { %s2327_s20 = sld [smem:[#allocation8_spill]] }
 0x49b   : > { %s22_s21 = sadd.s32 1, %s2323_s14  }
 0x49c   : > { %p19_p10 = scmp.ge.s32.totalorder %s22_s21, 5  }
 0x49e   :  { %21 = sbr.rel (!%p19_p10) target bundleno = 3 (0x3), region = 170 }

</bundles_post_ra>
